<compile_context>
chip_gen: v7x
topology: tpu7x:2x2x1
jax: 0.10.0
libtpu: 0.0.40
codegen_flags: <defaults>
</compile_context>

<pallas_src>
import functools
import math

import jax
import jax.numpy as jnp
from jax.experimental import pallas as pl
from jax.experimental.pallas import tpu as pltpu


def _round_up(x, m):
    return (x + m - 1) // m * m


def _pick_tile(n, target, quantum):
    """Largest multiple of `quantum` that divides n and is <= target (>= quantum).

    `quantum` must divide n (n is always a multiple of 128 here).
    """
    t = max(quantum, min(target, n))
    t = (t // quantum) * quantum
    while t > quantum and n % t != 0:
        t -= quantum
    return t


def _maybe_bf16_adj(adj_f32):
    """Stream the O(N^2) adjacency in bf16 when the cast is lossless (0/1 graphs)."""
    try:
        adj_bf = adj_f32.astype(jnp.bfloat16)
        lossless = bool(jnp.all(adj_bf.astype(jnp.float32) == adj_f32))
    except jax.errors.ConcretizationTypeError:
        return adj_f32            # values unknown under tracing: stay exact
    return adj_bf if lossless else adj_f32


# ---------------------------------------------------------------------------
# Kernel 1: projection   h = x @ W + b,   f1 = h @ v0,   f2 = h @ v1
# (v0/v1 are passed transposed as (1, c_out) so the per-node dot is a
#  VPU multiply + lane reduction — no narrow-N matmul needed.)
# ---------------------------------------------------------------------------
def _proj_kernel(x_ref, w_ref, b_ref, v0t_ref, v1t_ref, h_ref, f1_ref, f2_ref):
    h = jnp.dot(x_ref[...], w_ref[...], preferred_element_type=jnp.float32)
    h = h + b_ref[...]
    h_ref[...] = h.astype(h_ref.dtype)
    f1_ref[...] = jnp.sum(h * v0t_ref[...], axis=1, keepdims=True).astype(f1_ref.dtype)
    f2_ref[...] = jnp.sum(h * v1t_ref[...], axis=1, keepdims=True).astype(f2_ref.dtype)


# ---------------------------------------------------------------------------
# Kernel 2: masked softmax over the adjacency + aggregation (flash-style
# accumulation over column tiles; column axis is the reduction grid axis).
# ---------------------------------------------------------------------------
def _gat_attn_kernel(hc_ref, adj_ref, f1_ref, f2t_ref, o_ref,
                     den_acc, out_acc, *, temp, tile_c, h_resident):
    j = pl.program_id(1)

    @pl.when(j == 0)
    def _init():
        den_acc[...] = jnp.zeros_like(den_acc)
        out_acc[...] = jnp.zeros_like(out_acc)

    adj = adj_ref[...].astype(jnp.float32)                       # bf16 -> f32 upcast
    logits = adj * (f1_ref[...] + f2t_ref[...])                  # (TR, TC)
    # sigmoid(x) - 0.5 == 0.5 * tanh(0.5 * x): one EUP push instead of exp+recip.
    s = 0.5 * jnp.tanh(0.5 * logits)
    # torch .to_sparse() keeps only non-zero entries of sigmoid(L)-0.5; in exact
    # arithmetic that set is {L != 0} (this form is dtype/lowering robust).
    mask = logits != 0.0
    # s is bounded in (-0.5, 0.5), so exp(s / temp) needs no max-subtraction
    # (finite in f32 for temp >~ 0.006).
    p = jnp.where(mask, jnp.exp(s * (1.0 / temp)), 0.0)
    den_acc[...] += jnp.sum(p, axis=1, keepdims=True)

    if h_resident:
        start = pl.multiple_of(j * tile_c, tile_c)
        hc = hc_ref[pl.ds(start, tile_c), :]
    else:
        hc = hc_ref[...]
    out_acc[...] += jnp.dot(p, hc, preferred_element_type=jnp.float32)

    @pl.when(j == pl.num_programs(1) - 1)
    def _finalize():
        den = den_acc[...]
        inv = jnp.where(den > 0.0, 1.0 / den, 0.0)   # isolated rows -> zeros
        o_ref[...] = (out_acc[...] * inv).astype(o_ref.dtype)


# ---------------------------------------------------------------------------
# Wrapper
# ---------------------------------------------------------------------------
def gat_single_head_forward(node_feats, adj_matrix, W, b, v0, v1, *,
                            temp=1.0, tile_r=512, tile_c=1024,
                            h_resident_bytes=4 * 1024 * 1024):
    N, c_in = node_feats.shape
    c_out = W.shape[1]
    assert adj_matrix.shape == (N, N)

    f32 = jnp.float32
    x = node_feats.astype(f32)
    W = W.astype(f32)
    b2 = jnp.asarray(b, f32).reshape(1, c_out)
    v0t = jnp.asarray(v0, f32).reshape(1, c_out)
    v1t = jnp.asarray(v1, f32).reshape(1, c_out)

    # ---- pad only to a multiple of 128 (skipped when already aligned) ----
    n_pad = _round_up(N, 128)
    adj = _maybe_bf16_adj(adj_matrix.astype(f32))
    if n_pad != N:
        x = jnp.pad(x, ((0, n_pad - N), (0, 0)))
        adj = jnp.pad(adj, ((0, n_pad - N), (0, n_pad - N)))

    # ---- tile selection: lane-dense divisors of n_pad; keep nr >= 2 so both
    #      v7x TensorCores get row tiles on the "parallel" axis ----
    tile_c = _pick_tile(n_pad, tile_c, 128)
    tile_r = _pick_tile(n_pad, min(tile_r, max(n_pad // 2, 64)), 64)
    nr = n_pad // tile_r
    nc = n_pad // tile_c

    # ---------------- projection: h, f1, f2 ----------------
    tile_p = _pick_tile(n_pad, 512, 64)
    h, f1, f2 = pl.pallas_call(
        _proj_kernel,
        out_shape=(
            jax.ShapeDtypeStruct((n_pad, c_out), f32),
            jax.ShapeDtypeStruct((n_pad, 1), f32),
            jax.ShapeDtypeStruct((n_pad, 1), f32),
        ),
        grid_spec=pltpu.PrefetchScalarGridSpec(
            num_scalar_prefetch=0,
            grid=(n_pad // tile_p,),
            in_specs=[
                pl.BlockSpec((tile_p, c_in), lambda i: (i, 0)),
                pl.BlockSpec((c_in, c_out), lambda i: (0, 0)),
                pl.BlockSpec((1, c_out), lambda i: (0, 0)),
                pl.BlockSpec((1, c_out), lambda i: (0, 0)),
                pl.BlockSpec((1, c_out), lambda i: (0, 0)),
            ],
            out_specs=[
                pl.BlockSpec((tile_p, c_out), lambda i: (i, 0)),
                pl.BlockSpec((tile_p, 1), lambda i: (i, 0)),
                pl.BlockSpec((tile_p, 1), lambda i: (i, 0)),
            ],
        ),
        compiler_params=pltpu.CompilerParams(dimension_semantics=("parallel",)),
    )(x, W, b2, v0t, v1t)

    # Row vector of f2 for broadcasting against column tiles (cheap O(N) XLA reshape).
    f2t = f2.reshape(1, n_pad)

    # ---------------- attention + aggregation ----------------
    h_bytes = n_pad * c_out * 4
    h_resident = h_bytes <= h_resident_bytes
    if h_resident:
        # Constant block index -> h is DMA'd once and stays VMEM-resident.
        h_spec = pl.BlockSpec((n_pad, c_out), lambda i, j: (0, 0))
    else:
        h_spec = pl.BlockSpec((tile_c, c_out), lambda i, j: (j, 0))

    adj_isz = jnp.dtype(adj.dtype).itemsize
    vmem_est = (
        2 * tile_r * tile_c * adj_isz                 # adj tiles (double-buffered)
        + (h_bytes if h_resident else 2 * tile_c * c_out * 4)
        + 2 * tile_r * 128 * 4                        # f1 blocks (lane-padded)
        + 2 * 8 * tile_c * 4                          # f2^T blocks (sublane-padded)
        + 2 * tile_r * c_out * 4                      # output tiles
        + tile_r * 128 * 4 + tile_r * c_out * 4       # scratch accumulators
        + 4 * tile_r * tile_c * 4                     # logits / mask / p intermediates
    )
    vmem_limit = int(min(max(2 * vmem_est, 24 * 1024 * 1024), 48 * 1024 * 1024))

    flops = 2 * n_pad * n_pad * c_out + 8 * n_pad * n_pad
    bytes_accessed = (n_pad * n_pad * adj_isz
                      + 2 * n_pad * c_out * 4 + 3 * n_pad * 4)

    out = pl.pallas_call(
        functools.partial(_gat_attn_kernel, temp=float(temp),
                          tile_c=tile_c, h_resident=h_resident),
        out_shape=jax.ShapeDtypeStruct((n_pad, c_out), f32),
        grid_spec=pltpu.PrefetchScalarGridSpec(
            num_scalar_prefetch=0,
            grid=(nr, nc),
            in_specs=[
                h_spec,                                               # h (resident or col tile)
                pl.BlockSpec((tile_r, tile_c), lambda i, j: (i, j)),  # adjacency tile
                pl.BlockSpec((tile_r, 1), lambda i, j: (i, 0)),       # f1 (rows)
                pl.BlockSpec((1, tile_c), lambda i, j: (0, j)),       # f2^T (cols)
            ],
            out_specs=pl.BlockSpec((tile_r, c_out), lambda i, j: (i, 0)),
            scratch_shapes=[
                pltpu.VMEM((tile_r, 1), jnp.float32),       # softmax denominator
                pltpu.VMEM((tile_r, c_out), jnp.float32),   # weighted-sum accumulator
            ],
        ),
        compiler_params=pltpu.CompilerParams(
            dimension_semantics=("parallel", "arbitrary"),
            vmem_limit_bytes=vmem_limit,
        ),
        cost_estimate=pl.CostEstimate(
            flops=int(flops),
            transcendentals=int(2 * n_pad * n_pad),
            bytes_accessed=int(bytes_accessed),
        ),
    )(h, adj, f1, f2t)

    return out[:N, :]


# ---------------------------------------------------------------------------
# Parameter init matching the PyTorch module (W stored as (c_in, c_out)).
# ---------------------------------------------------------------------------
def init_gat_single_head_params(key, c_in, c_out, dtype=jnp.float32):
    kw, k0, k1 = jax.random.split(key, 3)
    bw = math.sqrt(6.0 / (c_in + c_out))
    bv = math.sqrt(6.0 / (c_out + 1))
    W = jax.random.uniform(kw, (c_in, c_out), dtype, minval=-bw, maxval=bw)
    b = jnp.zeros((c_out,), dtype)
    v0 = jax.random.uniform(k0, (c_out, 1), dtype, minval=-bv, maxval=bv)
    v1 = jax.random.uniform(k1, (c_out, 1), dtype, minval=-bv, maxval=bv)
    return W, b, v0, v1


# ---------------------------------------------------------------------------
# Pure-JAX reference (dense emulation of the torch sparse-softmax semantics).
# ---------------------------------------------------------------------------
def gat_single_head_reference(x, adj, W, b, v0, v1, temp=1.0):
    h = x @ W + b
    f1 = h @ v0
    f2 = h @ v1
    logits = adj * (f1 + f2.T)
    s = jax.nn.sigmoid(logits) - 0.5
    mask = logits != 0.0          # == (s != 0) in exact arithmetic
    val = jnp.where(mask, s / temp, -jnp.inf)
    m = jnp.max(val, axis=1, keepdims=True)
    m = jnp.where(jnp.isfinite(m), m, 0.0)
    e = jnp.where(mask, jnp.exp(val - m), 0.0)
    den = jnp.sum(e, axis=1, keepdims=True)
    attn = jnp.where(den > 0.0, e / den, 0.0)
    return attn @ h


if __name__ == "__main__":
    key = jax.random.PRNGKey(0)
    kx, ka, kp = jax.random.split(key, 3)

    # Small shapes consistent with GATSingleHead(c_in, c_out): N nodes.
    N, c_in, c_out = 200, 48, 32

    x = jax.random.normal(kx, (N, c_in), dtype=jnp.float32)
    # Random symmetric 0/1 adjacency with self-loops.
    a = (jax.random.uniform(ka, (N, N)) < 0.15).astype(jnp.float32)
    adj = jnp.maximum(jnp.maximum(a, a.T), jnp.eye(N, dtype=jnp.float32))

    W, b, v0, v1 = init_gat_single_head_params(kp, c_in, c_out)

    out = gat_single_head_forward(x, adj, W, b, v0, v1, temp=1.0)
    out = jax.block_until_ready(out)

    ref = gat_single_head_reference(x, adj, W, b, v0, v1, temp=1.0)

    assert out.shape == (N, c_out)
    assert out.dtype == jnp.float32
    max_err = float(jnp.max(jnp.abs(out - ref)))
    assert bool(jnp.allclose(out, ref, rtol=1e-5, atol=1e-5)), f"max abs err {max_err}"

    print("KERNEL_OK")
</pallas_src>

<mosaic_0001>
module attributes {stable_mosaic.version = 11 : i64} {
  func.func @_proj_kernel(%arg0: i32, %arg1: memref<256x48xf32, #tpu.memory_space<vmem>>, %arg2: memref<48x32xf32, #tpu.memory_space<vmem>>, %arg3: memref<1x32xf32, #tpu.memory_space<vmem>>, %arg4: memref<1x32xf32, #tpu.memory_space<vmem>>, %arg5: memref<1x32xf32, #tpu.memory_space<vmem>>, %arg6: memref<256x32xf32, #tpu.memory_space<vmem>>, %arg7: memref<256x1xf32, #tpu.memory_space<vmem>>, %arg8: memref<256x1xf32, #tpu.memory_space<vmem>>) attributes {dimension_semantics = [#tpu.dimension_semantics<parallel>], iteration_bounds = array<i64: 1>, scalar_prefetch = 0 : i64, scratch_operands = 0 : i64, tpu.core_type = #tpu.core_type<tc>, window_params = [{transform_indices = @transform_0, window_bounds = array<i64: 256, 48>}, {pipeline_mode = #tpu.pipeline_mode<synchronous>, transform_indices = @transform_1, window_bounds = array<i64: 48, 32>}, {pipeline_mode = #tpu.pipeline_mode<synchronous>, transform_indices = @transform_2, window_bounds = array<i64: 1, 32>}, {pipeline_mode = #tpu.pipeline_mode<synchronous>, transform_indices = @transform_3, window_bounds = array<i64: 1, 32>}, {pipeline_mode = #tpu.pipeline_mode<synchronous>, transform_indices = @transform_4, window_bounds = array<i64: 1, 32>}, {transform_indices = @transform_5, window_bounds = array<i64: 256, 32>}, {transform_indices = @transform_6, window_bounds = array<i64: 256, 1>}, {transform_indices = @transform_7, window_bounds = array<i64: 256, 1>}]} {
    %c0 = arith.constant 0 : index
    %c0_0 = arith.constant 0 : index
    %0 = vector.load %arg1[%c0, %c0_0] : memref<256x48xf32, #tpu.memory_space<vmem>>, vector<256x48xf32>
    %c0_1 = arith.constant 0 : index
    %c0_2 = arith.constant 0 : index
    %1 = vector.load %arg2[%c0_1, %c0_2] : memref<48x32xf32, #tpu.memory_space<vmem>>, vector<48x32xf32>
    %cst = arith.constant dense<0.000000e+00> : vector<256x32xf32>
    %2 = tpu.matmul %0, %1, %cst {dimension_numbers = #tpu.dot_dimension_numbers<[1], [0], [0], [1], [0, 0, 1, 1], [], []>} : vector<256x48xf32>, vector<48x32xf32>, vector<256x32xf32> -> vector<256x32xf32>
    %c0_3 = arith.constant 0 : index
    %c0_4 = arith.constant 0 : index
    %3 = vector.load %arg3[%c0_3, %c0_4] : memref<1x32xf32, #tpu.memory_space<vmem>>, vector<1x32xf32>
    %4 = vector.broadcast %3 : vector<1x32xf32> to vector<256x32xf32>
    %5 = arith.addf %2, %4 : vector<256x32xf32>
    %c0_5 = arith.constant 0 : index
    %c0_6 = arith.constant 0 : index
    %6 = vector.load %arg6[%c0_5, %c0_6] : memref<256x32xf32, #tpu.memory_space<vmem>>, vector<256x32xf32>
    tpu.vector_store %arg6[%c0_5, %c0_6], %5 {strides = array<i32>} : memref<256x32xf32, #tpu.memory_space<vmem>>, vector<256x32xf32>,
    %c0_7 = arith.constant 0 : index
    %c0_8 = arith.constant 0 : index
    %7 = vector.load %arg4[%c0_7, %c0_8] : memref<1x32xf32, #tpu.memory_space<vmem>>, vector<1x32xf32>
    %8 = vector.broadcast %7 : vector<1x32xf32> to vector<256x32xf32>
    %9 = arith.mulf %5, %8 : vector<256x32xf32>
    %cst_9 = arith.constant dense<0.000000e+00> : vector<256xf32>
    %10 = vector.multi_reduction <add>, %9, %cst_9 [1] : vector<256x32xf32> to vector<256xf32>
    %11 = vector.shape_cast %10 : vector<256xf32> to vector<256x1xf32>
    %c0_10 = arith.constant 0 : index
    %c0_11 = arith.constant 0 : index
    %12 = vector.load %arg7[%c0_10, %c0_11] : memref<256x1xf32, #tpu.memory_space<vmem>>, vector<256x1xf32>
    tpu.vector_store %arg7[%c0_10, %c0_11], %11 {strides = array<i32>} : memref<256x1xf32, #tpu.memory_space<vmem>>, vector<256x1xf32>,
    %c0_12 = arith.constant 0 : index
    %c0_13 = arith.constant 0 : index
    %13 = vector.load %arg5[%c0_12, %c0_13] : memref<1x32xf32, #tpu.memory_space<vmem>>, vector<1x32xf32>
    %14 = vector.broadcast %13 : vector<1x32xf32> to vector<256x32xf32>
    %15 = arith.mulf %5, %14 : vector<256x32xf32>
    %cst_14 = arith.constant dense<0.000000e+00> : vector<256xf32>
    %16 = vector.multi_reduction <add>, %15, %cst_14 [1] : vector<256x32xf32> to vector<256xf32>
    %17 = vector.shape_cast %16 : vector<256xf32> to vector<256x1xf32>
    %c0_15 = arith.constant 0 : index
    %c0_16 = arith.constant 0 : index
    %18 = vector.load %arg8[%c0_15, %c0_16] : memref<256x1xf32, #tpu.memory_space<vmem>>, vector<256x1xf32>
    tpu.vector_store %arg8[%c0_15, %c0_16], %17 {strides = array<i32>} : memref<256x1xf32, #tpu.memory_space<vmem>>, vector<256x1xf32>,
    return
  }
  func.func @transform_0(%arg0: i32) -> (i32, i32) {
    %c0_i32 = arith.constant 0 : i32
    %c0_i32_0 = arith.constant 0 : i32
    return %arg0, %c0_i32 : i32, i32
  }
  func.func @transform_1(%arg0: i32) -> (i32, i32) {
    %c0_i32 = arith.constant 0 : i32
    %c0_i32_0 = arith.constant 0 : i32
    %c0_i32_1 = arith.constant 0 : i32
    return %c0_i32, %c0_i32_0 : i32, i32
  }
  func.func @transform_2(%arg0: i32) -> (i32, i32) {
    %c0_i32 = arith.constant 0 : i32
    %c0_i32_0 = arith.constant 0 : i32
    %c0_i32_1 = arith.constant 0 : i32
    return %c0_i32, %c0_i32_0 : i32, i32
  }
  func.func @transform_3(%arg0: i32) -> (i32, i32) {
    %c0_i32 = arith.constant 0 : i32
    %c0_i32_0 = arith.constant 0 : i32
    %c0_i32_1 = arith.constant 0 : i32
    return %c0_i32, %c0_i32_0 : i32, i32
  }
  func.func @transform_4(%arg0: i32) -> (i32, i32) {
    %c0_i32 = arith.constant 0 : i32
    %c0_i32_0 = arith.constant 0 : i32
    %c0_i32_1 = arith.constant 0 : i32
    return %c0_i32, %c0_i32_0 : i32, i32
  }
  func.func @transform_5(%arg0: i32) -> (i32, i32) {
    %c0_i32 = arith.constant 0 : i32
    %c0_i32_0 = arith.constant 0 : i32
    return %arg0, %c0_i32 : i32, i32
  }
  func.func @transform_6(%arg0: i32) -> (i32, i32) {
    %c0_i32 = arith.constant 0 : i32
    %c0_i32_0 = arith.constant 0 : i32
    return %arg0, %c0_i32 : i32, i32
  }
  func.func @transform_7(%arg0: i32) -> (i32, i32) {
    %c0_i32 = arith.constant 0 : i32
    %c0_i32_0 = arith.constant 0 : i32
    return %arg0, %c0_i32 : i32, i32
  }
}

</mosaic_0001>

<bundles_post_ra>
// kernel: tpu_custom_call.1
= control target key start
LH: loop header
LB: loop body
LE: loop exit
PB: predicated region body
PF: predicated region fallthrough
CT: control target
= control target key end

     0   :  { %vm68_vm0 = vcmask 392192   ;;  %vm390_vm1 = vcmask 261120   ;;  %vm558_vm2 = vcmask 7168   ;;  %s1820_s1 = inlined_call_operand.vmem [shape: f32[48,32], index: 1, kind: input, shape index: {}]   ;;  %s1821_s0 = inlined_call_operand.vmem [shape: f32[256,48], index: 0, kind: input, shape index: {}]   ;;  %s1822_s2 = inlined_call_operand.vmem [shape: f32[1,32], index: 2, kind: input, shape index: {}]   ;;  %s1823_s3 = inlined_call_operand.vmem [shape: f32[1,32], index: 3, kind: input, shape index: {}]   ;;  %s1824_s4 = inlined_call_operand.vmem [shape: f32[1,32], index: 4, kind: input, shape index: {}]   ;;  %s1825_s5 = inlined_call_operand.vmem [shape: f32[256,32], index: 5, kind: output, shape index: {0}]   ;;  %s1826_s6 = inlined_call_operand.vmem [shape: f32[256,1], index: 6, kind: output, shape index: {1}]   ;;  %s1827_s7 = inlined_call_operand.vmem [shape: f32[256,1], index: 7, kind: output, shape index: {2}]  }
   0x1   :  { %v55_v0 = vld [vmem:[%s1820_s1] sm:$0xff]  ;;  %v56_v1 = vld [vmem:[%s1820_s1 + $0x8] sm:$0xff]  ;;  %v57_v2 = vld [vmem:[%s1820_s1 + $0x10] sm:$0xff] }
   0x2   :  { %v903_v3 = vpack.c.bf16 %v56_v1, %v55_v0  ;;  %v58_v4 = vld [vmem:[%s1820_s1 + $0x18] sm:$0xff]  ;;  %v59_v6 = vld [vmem:[%s1820_s1 + $0x20] sm:$0xff]  ;;  %v60_v7 = vld [vmem:[%s1820_s1 + $0x28] sm:$0xff] }
   0x3   :  { %v907_v5 = vpack.c.bf16 %v58_v4, %v57_v2  ;;  %v23_v8 = vld [vmem:[%s1821_s0] sm:$0xff]  ;;  %v911_v10 = vpack.c.bf16 %v60_v7, %v59_v6  ;;  %v24_v11 = vld [vmem:[%s1821_s0 + $0x8] sm:$0xff]  ;;  %v25_v13 = vld [vmem:[%s1821_s0 + $0x10] sm:$0xff] }
   0x4   :  { %904 = vmatprep.subr.bf16.mxu0 %v903_v3  ;;  %915 = vmatprep.subr.bf16.mxu1 %v903_v3  ;;  %v39_v9 = vld [vmem:[%s1821_s0 + $0x80] sm:$0xff]  ;;  %v40_v12 = vld [vmem:[%s1821_s0 + $0x88] sm:$0xff]  ;;  %v41_v14 = vld [vmem:[%s1821_s0 + $0x90] sm:$0xff] }
   0x5   :  { %906 = vmatpush3.bf16.msra.mxu0 %v903_v3  ;;  %918 = vmatpush3.bf16.msra.mxu1 %v903_v3  ;;  %v26_v15 = vld [vmem:[%s1821_s0 + $0x18] sm:$0xff]  ;;  %v27_v17 = vld [vmem:[%s1821_s0 + $0x20] sm:$0xff]  ;;  %v28_v19 = vld [vmem:[%s1821_s0 + $0x28] sm:$0xff] }
   0x6   :  { %908 = vmatprep.subr.bf16.mxu0 %v907_v5  ;;  %916 = vmatprep.subr.bf16.mxu1 %v907_v5  ;;  %v42_v16 = vld [vmem:[%s1821_s0 + $0x98] sm:$0xff]  ;;  %v43_v18 = vld [vmem:[%s1821_s0 + $0xa0] sm:$0xff]  ;;  %v44_v20 = vld [vmem:[%s1821_s0 + $0xa8] sm:$0xff] }
   0x7   :  { %855 = vmatprep.mubr.msk.f32.mxu0 %vm68_vm0, %v23_v8  ;;  %879 = vmatprep.mubr.msk.f32.mxu1 %vm68_vm0, %v39_v9  ;;  %v29_v21 = vld [vmem:[%s1821_s0 + $0x30] sm:$0xff]  ;;  %v30_v23 = vld [vmem:[%s1821_s0 + $0x38] sm:$0xff]  ;;  %v31_v25 = vld [vmem:[%s1821_s0 + $0x40] sm:$0xff] }
   0x8   :  { %v45_v22 = vld [vmem:[%s1821_s0 + $0xb0] sm:$0xff]  ;;  %v46_v24 = vld [vmem:[%s1821_s0 + $0xb8] sm:$0xff]  ;;  %v47_v26 = vld [vmem:[%s1821_s0 + $0xc0] sm:$0xff] }
   0x9   :  { %910 = vmatpush3.bf16.msra.mxu0 %v907_v5  ;;  %919 = vmatpush3.bf16.msra.mxu1 %v907_v5  ;;  %v32_v27 = vld [vmem:[%s1821_s0 + $0x48] sm:$0xff]  ;;  %v33_v29 = vld [vmem:[%s1821_s0 + $0x50] sm:$0xff]  ;;  %v34_v31 = vld [vmem:[%s1821_s0 + $0x58] sm:$0xff] }
   0xa   :  { %912 = vmatprep.subr.bf16.mxu0 %v911_v10  ;;  %917 = vmatprep.subr.bf16.mxu1 %v911_v10  ;;  %v48_v28 = vld [vmem:[%s1821_s0 + $0xc8] sm:$0xff]  ;;  %v49_v30 = vld [vmem:[%s1821_s0 + $0xd0] sm:$0xff]  ;;  %v50_v32 = vld [vmem:[%s1821_s0 + $0xd8] sm:$0xff] }
   0xb   :  { %v35_v33 = vld [vmem:[%s1821_s0 + $0x60] sm:$0xff]  ;;  %v36_v35 = vld [vmem:[%s1821_s0 + $0x68] sm:$0xff]  ;;  %v37_v37 = vld [vmem:[%s1821_s0 + $0x70] sm:$0xff] }
   0xc   :  { %v51_v34 = vld [vmem:[%s1821_s0 + $0xe0] sm:$0xff]  ;;  %v52_v36 = vld [vmem:[%s1821_s0 + $0xe8] sm:$0xff]  ;;  %v53_v38 = vld [vmem:[%s1821_s0 + $0xf0] sm:$0xff] }
   0xd   :  { %914 = vmatpush3.bf16.msra.mxu0 %v911_v10  ;;  %920 = vmatpush3.bf16.msra.mxu1 %v911_v10  ;;  %v38_v39 = vld [vmem:[%s1821_s0 + $0x78] sm:$0xff]  ;;  %v1110_v41 = vld [vmem:[%s1822_s2] ss:$0 sm:$0xff] }
   0xe   :  { %v54_v40 = vld [vmem:[%s1821_s0 + $0xf8] sm:$0xff]  ;;  %v1115_v44 = vld [vmem:[%s1823_s3] ss:$0 sm:$0xff] }
   0xf   :  { %v1122_v49 = vld [vmem:[%s1824_s4] ss:$0 sm:$0xff] }
  0x10   :  { %856 = vmatmul.mubr.msk.f32.vlgmr.msra.gmra.mrb[0].mxu0 %vm68_vm0, %v24_v11  ;;  %880 = vmatmul.mubr.msk.f32.vlgmr.msra.gmra.mrb[0].mxu1 %vm68_vm0, %v40_v12 }
  0x11   :  { %858 = vmatprep.mubr.msk.f32.mxu0 %vm68_vm0, %v25_v13  ;;  %882 = vmatprep.mubr.msk.f32.mxu1 %vm68_vm0, %v41_v14 }
  0x14   :  { %859 = vmatmul.mubr.msk.f32.gmra.mrb[2].mxu0 %vm68_vm0, %v26_v15  ;;  %883 = vmatmul.mubr.msk.f32.gmra.mrb[2].mxu1 %vm68_vm0, %v42_v16 }
  0x15   :  { %861 = vmatprep.mubr.msk.f32.mxu0 %vm68_vm0, %v27_v17  ;;  %885 = vmatprep.mubr.msk.f32.mxu1 %vm68_vm0, %v43_v18 }
  0x18   :  { %862 = vmatmul.mubr.msk.f32.gmra.mrb[4].mxu0 %vm68_vm0, %v28_v19  ;;  %886 = vmatmul.mubr.msk.f32.gmra.mrb[4].mxu1 %vm68_vm0, %v44_v20 }
  0x19   :  { %864 = vmatprep.mubr.msk.f32.mxu0 %vm68_vm0, %v29_v21  ;;  %888 = vmatprep.mubr.msk.f32.mxu1 %vm68_vm0, %v45_v22 }
  0x1c   :  { %865 = vmatmul.mubr.msk.f32.gmra.mrb[6].mxu0 %vm68_vm0, %v30_v23  ;;  %889 = vmatmul.mubr.msk.f32.gmra.mrb[6].mxu1 %vm68_vm0, %v46_v24 }
  0x1d   :  { %867 = vmatprep.mubr.msk.f32.mxu0 %vm68_vm0, %v31_v25  ;;  %891 = vmatprep.mubr.msk.f32.mxu1 %vm68_vm0, %v47_v26 }
  0x20   :  { %868 = vmatmul.mubr.msk.f32.gmra.mrb[8].mxu0 %vm68_vm0, %v32_v27  ;;  %892 = vmatmul.mubr.msk.f32.gmra.mrb[8].mxu1 %vm68_vm0, %v48_v28 }
  0x21   :  { %870 = vmatprep.mubr.msk.f32.mxu0 %vm68_vm0, %v33_v29  ;;  %894 = vmatprep.mubr.msk.f32.mxu1 %vm68_vm0, %v49_v30 }
  0x24   :  { %871 = vmatmul.mubr.msk.f32.gmra.mrb[10].mxu0 %vm68_vm0, %v34_v31  ;;  %895 = vmatmul.mubr.msk.f32.gmra.mrb[10].mxu1 %vm68_vm0, %v50_v32 }
  0x25   :  { %873 = vmatprep.mubr.msk.f32.mxu0 %vm68_vm0, %v35_v33  ;;  %897 = vmatprep.mubr.msk.f32.mxu1 %vm68_vm0, %v51_v34 }
  0x28   :  { %874 = vmatmul.mubr.msk.f32.gmra.mrb[12].mxu0 %vm68_vm0, %v36_v35  ;;  %898 = vmatmul.mubr.msk.f32.gmra.mrb[12].mxu1 %vm68_vm0, %v52_v36 }
  0x29   :  { %876 = vmatprep.mubr.msk.f32.mxu0 %vm68_vm0, %v37_v37  ;;  %900 = vmatprep.mubr.msk.f32.mxu1 %vm68_vm0, %v53_v38 }
  0x2c   :  { %877 = vmatmul.mubr.msk.f32.gmra.mrb[14].mxu0 %vm68_vm0, %v38_v39  ;;  %901 = vmatmul.mubr.msk.f32.gmra.mrb[14].mxu1 %vm68_vm0, %v54_v40 }
  0xe3   :  { %v857_v42 = vpop.f32.mrb[0].mxu0  ;;  %v881_v43 = vpop.f32.mrb[0].mxu1 }
  0xe4   :  { %v237_v45 = vadd.f32 %v857_v42, %v1110_v41  ;;  %v317_v46 = vadd.f32 %v881_v43, %v1110_v41  ;;  %v231_v47 = vpop.f32.mrb[1].mxu0  ;;  %v311_v48 = vpop.f32.mrb[1].mxu1 }
  0xe5   :  { %v232_v50 = vadd.f32 %v1110_v41, %v231_v47  ;;  %v312_v51 = vadd.f32 %v1110_v41, %v311_v48 }
  0xe6   :  { %392 = vst.msk [vmem:[%s1825_s5 + $0x8] sm:$0xff] %vm390_vm1, %v237_v45  ;;  %408 = vst.msk [vmem:[%s1825_s5 + $0x88] sm:$0xff] %vm390_vm1, %v317_v46  ;;  %v447_v52 = vmul.f32 %v1115_v44, %v317_v46  ;;  %v431_v53 = vmul.f32 %v1115_v44, %v237_v45  ;;  %v599_v54 = vmul.f32 %v1122_v49, %v237_v45 }
  0xe7   :  { %391 = vst.msk [vmem:[%s1825_s5] sm:$0xff] %vm390_vm1, %v232_v50  ;;  %407 = vst.msk [vmem:[%s1825_s5 + $0x80] sm:$0xff] %vm390_vm1, %v312_v51  ;;  %v860_v55 = vpop.f32.mrb[2].mxu0  ;;  %v884_v56 = vpop.f32.mrb[2].mxu1  ;;  %v430_v59 = vmul.f32 %v1115_v44, %v232_v50  ;;  %v615_v6 = vmul.f32 %v1122_v49, %v317_v46  ;;  %v446_v7 = vmul.f32 %v1115_v44, %v312_v51 }
  0xe8   :  { %v513_v57 = vsel %vm390_vm1, %v447_v52, 0.0  ;;  %v465_v58 = vsel %vm390_vm1, %v431_v53, 0.0  ;;  %v247_v60 = vadd.f32 %v860_v55, %v1110_v41  ;;  %v241_v61 = vpop.f32.mrb[3].mxu0  ;;  %v321_v62 = vpop.f32.mrb[3].mxu1  ;;  %v327_v0 = vadd.f32 %v884_v56, %v1110_v41 }
  0xe9   :  { %514 = vadd.xlane.f32.xlu1 %v513_v57  ;;  %466 = vadd.xlane.f32.xlu0 %v465_v58  ;;  %v242_v63 = vadd.f32 %v1110_v41, %v241_v61  ;;  %v322_v1 = vadd.f32 %v1110_v41, %v321_v62  ;;  %v633_v4 = vsel %vm390_vm1, %v599_v54, 0.0  ;;  %v462_v5 = vsel %vm390_vm1, %v430_v59, 0.0 }
  0xea   :  { %394 = vst.msk [vmem:[%s1825_s5 + $0x18] sm:$0xff] %vm390_vm1, %v247_v60  ;;  %410 = vst.msk [vmem:[%s1825_s5 + $0x98] sm:$0xff] %vm390_vm1, %v327_v0  ;;  %v598_v10 = vmul.f32 %v1122_v49, %v232_v50  ;;  %v433_v13 = vmul.f32 %v1115_v44, %v247_v60  ;;  %v681_v18 = vsel %vm390_vm1, %v615_v6, 0.0  ;;  %v510_v19 = vsel %vm390_vm1, %v446_v7, 0.0 }
  0xeb   :  { %393 = vst.msk [vmem:[%s1825_s5 + $0x10] sm:$0xff] %vm390_vm1, %v242_v63  ;;  %v863_v2 = vpop.f32.mrb[4].mxu0  ;;  %v887_v3 = vpop.f32.mrb[4].mxu1  ;;  %409 = vst.msk [vmem:[%s1825_s5 + $0x90] sm:$0xff] %vm390_vm1, %v322_v1  ;;  %v614_v24 = vmul.f32 %v1122_v49, %v312_v51  ;;  %v449_v26 = vmul.f32 %v1115_v44, %v327_v0  ;;  %v601_v27 = vmul.f32 %v1122_v49, %v247_v60 }
  0xec   :  { %v251_v8 = vpop.f32.mrb[5].mxu0  ;;  %v331_v9 = vpop.f32.mrb[5].mxu1  ;;  %v1174_v11 = vadd.f32 %v863_v2, %v1110_v41  ;;  %v1181_v14 = vadd.f32 %v887_v3, %v1110_v41  ;;  %v630_v23 = vsel %vm390_vm1, %v598_v10, 0.0  ;;  %v471_v25 = vsel %vm390_vm1, %v433_v13, 0.0 }
  0xed   :  { %634 = vadd.xlane.f32.xlu1 %v633_v4  ;;  %463 = vadd.xlane.f32.xlu0 %v462_v5  ;;  %v1177_v12 = vadd.f32 %v1110_v41, %v251_v8  ;;  %v1194_v15 = vadd.f32 %v1110_v41, %v331_v9  ;;  %v448_v29 = vmul.f32 %v1115_v44, %v322_v1  ;;  %v678_v42 = vsel %vm390_vm1, %v614_v24, 0.0 }
  0xee   :  { %396 = vst.msk [vmem:[%s1825_s5 + $0x28] sm:$0xff] %vm390_vm1, %v1174_v11  ;;  %412 = vst.msk [vmem:[%s1825_s5 + $0xa8] sm:$0xff] %vm390_vm1, %v1181_v14  ;;  %v617_v30 = vmul.f32 %v1122_v49, %v327_v0  ;;  %v600_v31 = vmul.f32 %v1122_v49, %v242_v63  ;;  %v432_v35 = vmul.f32 %v1115_v44, %v242_v63  ;;  %v519_v46 = vsel %vm390_vm1, %v449_v26, 0.0 }
  0xef   :  { %395 = vst.msk [vmem:[%s1825_s5 + $0x20] sm:$0xff] %vm390_vm1, %v1177_v12  ;;  %v866_v16 = vpop.f32.mrb[6].mxu0  ;;  %v890_v17 = vpop.f32.mrb[6].mxu1  ;;  %411 = vst.msk [vmem:[%s1825_s5 + $0xa0] sm:$0xff] %vm390_vm1, %v1194_v15  ;;  %v616_v36 = vmul.f32 %v1122_v49, %v322_v1  ;;  %v435_v37 = vmul.f32 %v1115_v44, %v1174_v11  ;;  %v434_v43 = vmul.f32 %v1115_v44, %v1177_v12  ;;  %v639_v47 = vsel %vm390_vm1, %v601_v27, 0.0 }
  0xf0   :  { %v1204_v20 = vadd.f32 %v866_v16, %v1110_v41  ;;  %v261_v21 = vpop.f32.mrb[7].mxu0  ;;  %v341_v22 = vpop.f32.mrb[7].mxu1  ;;  %v1228_v32 = vadd.f32 %v890_v17, %v1110_v41  ;;  %v451_v48 = vmul.f32 %v1115_v44, %v1181_v14  ;;  %v450_v50 = vmul.f32 %v1115_v44, %v1194_v15 }
  0xf1   :  { %682 = vadd.xlane.f32.xlu1 %v681_v18  ;;  %511 = vadd.xlane.f32.xlu0 %v510_v19  ;;  %v1222_v28 = vadd.f32 %v1110_v41, %v261_v21  ;;  %v1240_v38 = vadd.f32 %v1110_v41, %v341_v22  ;;  %v516_v51 = vsel %vm390_vm1, %v448_v29, 0.0  ;;  %v687_v52 = vsel %vm390_vm1, %v617_v30, 0.0 }
  0xf2   :  { %398 = vst.msk [vmem:[%s1825_s5 + $0x38] sm:$0xff] %vm390_vm1, %v1204_v20  ;;  %414 = vst.msk [vmem:[%s1825_s5 + $0xb8] sm:$0xff] %vm390_vm1, %v1228_v32  ;;  %v636_v53 = vsel %vm390_vm1, %v600_v31, 0.0  ;;  %v1271_v57 = vsel %vm390_vm1, %v432_v35, 0.0  ;;  %v1274_v58 = vsel %vm390_vm1, %v616_v36, 0.0  ;;  %v1277_v59 = vsel %vm390_vm1, %v435_v37, 0.0 }
  0xf3   :  { %v869_v33 = vpop.f32.mrb[8].mxu0  ;;  %v893_v34 = vpop.f32.mrb[8].mxu1  ;;  %397 = vst.msk [vmem:[%s1825_s5 + $0x30] sm:$0xff] %vm390_vm1, %v1222_v28  ;;  %413 = vst.msk [vmem:[%s1825_s5 + $0xb0] sm:$0xff] %vm390_vm1, %v1240_v38  ;;  %v1281_v63 = vsel %vm390_vm1, %v434_v43, 0.0  ;;  %v1291_v3 = vsel %vm390_vm1, %v451_v48, 0.0 }
  0xf4   :  { %v271_v39 = vpop.f32.mrb[9].mxu0  ;;  %v351_v40 = vpop.f32.mrb[9].mxu1  ;;  %v277_v45 = vadd.f32 %v869_v33, %v1110_v41  ;;  %v357_v60 = vadd.f32 %v893_v34, %v1110_v41  ;;  %v1294_v4 = vsel %vm390_vm1, %v450_v50, 0.0 }
  0xf5   :  { %472 = vadd.xlane.f32.xlu1 %v471_v25  ;;  %631 = vadd.xlane.f32.xlu0 %v630_v23  ;;  %v272_v54 = vadd.f32 %v1110_v41, %v271_v39  ;;  %v352_v0 = vadd.f32 %v1110_v41, %v351_v40 }
  0xf6   :  { %400 = vst.msk [vmem:[%s1825_s5 + $0x48] sm:$0xff] %vm390_vm1, %v277_v45  ;;  %v439_v1 = vmul.f32 %v1115_v44, %v277_v45  ;;  %416 = vst.msk [vmem:[%s1825_s5 + $0xc8] sm:$0xff] %vm390_vm1, %v357_v60  ;;  %v455_v5 = vmul.f32 %v1115_v44, %v357_v60  ;;  %v607_v10 = vmul.f32 %v1122_v49, %v277_v45 }
  0xf7   :  { %v872_v55 = vpop.f32.mrb[10].mxu0  ;;  %v896_v56 = vpop.f32.mrb[10].mxu1  ;;  %399 = vst.msk [vmem:[%s1825_s5 + $0x40] sm:$0xff] %vm390_vm1, %v272_v54  ;;  %v438_v2 = vmul.f32 %v1115_v44, %v272_v54  ;;  %415 = vst.msk [vmem:[%s1825_s5 + $0xc0] sm:$0xff] %vm390_vm1, %v352_v0  ;;  %v454_v9 = vmul.f32 %v1115_v44, %v352_v0  ;;  %v606_v18 = vmul.f32 %v1122_v49, %v272_v54 }
  0xf8   :  { %v281_v61 = vpop.f32.mrb[11].mxu0  ;;  %v361_v62 = vpop.f32.mrb[11].mxu1  ;;  %v287_v6 = vadd.f32 %v872_v55, %v1110_v41  ;;  %v1307_v7 = vsel %vm390_vm1, %v439_v1, 0.0  ;;  %v1315_v17 = vsel %vm390_vm1, %v455_v5, 0.0  ;;  %v367_v21 = vadd.f32 %v896_v56, %v1110_v41 }
  0xf9   :  { %520 = vadd.xlane.f32.xlu1 %v519_v46  ;;  %679 = vadd.xlane.f32.xlu0 %v678_v42  ;;  %v1310_v8 = vsel %vm390_vm1, %v438_v2, 0.0  ;;  %v282_v19 = vadd.f32 %v1110_v41, %v281_v61  ;;  %v1325_v24 = vsel %vm390_vm1, %v454_v9, 0.0  ;;  %v1328_v25 = vsel %vm390_vm1, %v607_v10, 0.0 }
  0xfa   :  { %402 = vst.msk [vmem:[%s1825_s5 + $0x58] sm:$0xff] %vm390_vm1, %v287_v6  ;;  %v623_v26 = vmul.f32 %v1122_v49, %v357_v60  ;;  %v622_v27 = vmul.f32 %v1122_v49, %v352_v0  ;;  %v1333_v29 = vsel %vm390_vm1, %v606_v18, 0.0  ;;  %418 = vst.msk [vmem:[%s1825_s5 + $0xd8] sm:$0xff] %vm390_vm1, %v367_v21  ;;  %v362_v30 = vadd.f32 %v1110_v41, %v361_v62 }
  0xfb   :  { %v875_v13 = vpop.f32.mrb[12].mxu0  ;;  %v899_v16 = vpop.f32.mrb[12].mxu1  ;;  %401 = vst.msk [vmem:[%s1825_s5 + $0x50] sm:$0xff] %vm390_vm1, %v282_v19  ;;  %v441_v31 = vmul.f32 %v1115_v44, %v287_v6  ;;  %v440_v33 = vmul.f32 %v1115_v44, %v282_v19  ;;  %v457_v36 = vmul.f32 %v1115_v44, %v367_v21  ;;  %v609_v46 = vmul.f32 %v1122_v49, %v287_v6 }
  0xfc   :  { %v291_v22 = vpop.f32.mrb[13].mxu0  ;;  %v371_v23 = vpop.f32.mrb[13].mxu1  ;;  %v1347_v34 = vsel %vm390_vm1, %v623_v26, 0.0  ;;  %v1350_v35 = vsel %vm390_vm1, %v622_v27, 0.0  ;;  %v297_v37 = vadd.f32 %v875_v13, %v1110_v41  ;;  %417 = vst.msk [vmem:[%s1825_s5 + $0xd0] sm:$0xff] %vm390_vm1, %v362_v30  ;;  %v456_v45 = vmul.f32 %v1115_v44, %v362_v30 }
  0xfd   :  { %640 = vadd.xlane.f32.xlu1 %v639_v47  ;;  %517 = vadd.xlane.f32.xlu0 %v516_v51  ;;  %v1359_v42 = vsel %vm390_vm1, %v441_v31, 0.0  ;;  %v1362_v43 = vsel %vm390_vm1, %v440_v33, 0.0  ;;  %v1367_v50 = vsel %vm390_vm1, %v457_v36, 0.0  ;;  %v608_v51 = vmul.f32 %v1122_v49, %v282_v19 }
  0xfe   :  { %404 = vst.msk [vmem:[%s1825_s5 + $0x68] sm:$0xff] %vm390_vm1, %v297_v37  ;;  %v292_v54 = vadd.f32 %v1110_v41, %v291_v22  ;;  %v377_v55 = vadd.f32 %v899_v16, %v1110_v41  ;;  %v1377_v56 = vsel %vm390_vm1, %v456_v45, 0.0  ;;  %v624_v60 = vmul.f32 %v1122_v49, %v362_v30 }
  0xff   :  { %v878_v39 = vpop.f32.mrb[14].mxu0  ;;  %v902_v40 = vpop.f32.mrb[14].mxu1  ;;  %v1385_v61 = vsel %vm390_vm1, %v608_v51, 0.0  ;;  %v372_v62 = vadd.f32 %v1110_v41, %v371_v23  ;;  %v443_v0 = vmul.f32 %v1115_v44, %v297_v37  ;;  %v611_v18 = vmul.f32 %v1122_v49, %v297_v37 }
 0x100   :  { %v301_v47 = vpop.f32.mrb[15].mxu0  ;;  %v381_v48 = vpop.f32.mrb[15].mxu1  ;;  %403 = vst.msk [vmem:[%s1825_s5 + $0x60] sm:$0xff] %vm390_vm1, %v292_v54  ;;  %420 = vst.msk [vmem:[%s1825_s5 + $0xe8] sm:$0xff] %vm390_vm1, %v377_v55  ;;  %v442_v1 = vmul.f32 %v1115_v44, %v292_v54  ;;  %v1402_v5 = vsel %vm390_vm1, %v624_v60, 0.0  ;;  %v459_v6 = vmul.f32 %v1115_v44, %v377_v55  ;;  %v307_v9 = vadd.f32 %v878_v39, %v1110_v41 }
 0x101   :  { %688 = vadd.xlane.f32.xlu1 %v687_v52  ;;  %637 = vadd.xlane.f32.xlu0 %v636_v53  ;;  %v1380_v52 = vsel %vm390_vm1, %v609_v46, 0.0  ;;  %v625_v53 = vmul.f32 %v1122_v49, %v367_v21  ;;  %419 = vst.msk [vmem:[%s1825_s5 + $0xe0] sm:$0xff] %vm390_vm1, %v372_v62  ;;  %v1413_v10 = vsel %vm390_vm1, %v443_v0, 0.0  ;;  %v458_v16 = vmul.f32 %v1115_v44, %v372_v62 }
 0x102   :  { %v1416_v13 = vsel %vm390_vm1, %v442_v1, 0.0  ;;  %v1421_v19 = vsel %vm390_vm1, %v459_v6, 0.0  ;;  %406 = vst.msk [vmem:[%s1825_s5 + $0x78] sm:$0xff] %vm390_vm1, %v307_v9  ;;  %v387_v21 = vadd.f32 %v902_v40, %v1110_v41  ;;  %v1434_v23 = vsel %vm390_vm1, %v611_v18, 0.0 }
 0x103   :  { %v1399_v2 = vsel %vm390_vm1, %v625_v53, 0.0  ;;  %v1431_v22 = vsel %vm390_vm1, %v458_v16, 0.0  ;;  %v627_v26 = vmul.f32 %v1122_v49, %v377_v55  ;;  %v626_v27 = vmul.f32 %v1122_v49, %v372_v62 }
 0x104   :  { %422 = vst.msk [vmem:[%s1825_s5 + $0xf8] sm:$0xff] %vm390_vm1, %v387_v21  ;;  %v382_v31 = vadd.f32 %v1110_v41, %v381_v48  ;;  %v445_v33 = vmul.f32 %v1115_v44, %v307_v9  ;;  %v461_v40 = vmul.f32 %v1115_v44, %v387_v21  ;;  %v613_v45 = vmul.f32 %v1122_v49, %v307_v9 }
 0x105   :  { %469 = vadd.xlane.f32.xlu1 %v1271_v57  ;;  %685 = vadd.xlane.f32.xlu0 %v1274_v58  ;;  %v610_v57 = vmul.f32 %v1122_v49, %v292_v54  ;;  %v302_v58 = vadd.f32 %v1110_v41, %v301_v47  ;;  %v1455_v37 = vsel %vm390_vm1, %v627_v26, 0.0  ;;  %v1458_v39 = vsel %vm390_vm1, %v626_v27, 0.0 }
 0x106   :  { %421 = vst.msk [vmem:[%s1825_s5 + $0xf0] sm:$0xff] %vm390_vm1, %v382_v31  ;;  %v1467_v41 = vsel %vm390_vm1, %v445_v33, 0.0  ;;  %v1475_v47 = vsel %vm390_vm1, %v461_v40, 0.0  ;;  %v1478_v48 = vsel %vm390_vm1, %v613_v45, 0.0  ;;  %v629_v51 = vmul.f32 %v1122_v49, %v387_v21 }
 0x107   :  { %v1439_v30 = vsel %vm390_vm1, %v610_v57, 0.0  ;;  %405 = vst.msk [vmem:[%s1825_s5 + $0x70] sm:$0xff] %vm390_vm1, %v302_v58  ;;  %v444_v36 = vmul.f32 %v1115_v44, %v302_v58  ;;  %v612_v46 = vmul.f32 %v1122_v49, %v302_v58  ;;  %v628_v54 = vmul.f32 %v1122_v49, %v382_v31 }
 0x108   :  { %v603_v55 = vmul.f32 %v1122_v49, %v1174_v11  ;;  %v602_v53 = vmul.f32 %v1122_v49, %v1177_v12  ;;  %v1495_v0 = vsel %vm390_vm1, %v629_v51, 0.0  ;;  %v619_v6 = vmul.f32 %v1122_v49, %v1181_v14 }
 0x109   :  { %478 = vadd.xlane.f32.xlu1 %v1277_v59  ;;  %475 = vadd.xlane.f32.xlu0 %v1281_v63  ;;  %v1470_v59 = vsel %vm390_vm1, %v444_v36, 0.0  ;;  %v460_v63 = vmul.f32 %v1115_v44, %v382_v31  ;;  %v1490_v62 = vsel %vm390_vm1, %v612_v46, 0.0  ;;  %v1498_v1 = vsel %vm390_vm1, %v628_v54, 0.0 }
 0x10a   :  { %v645_v11 = vsel %vm390_vm1, %v603_v55, 0.0  ;;  %v642_v12 = vsel %vm390_vm1, %v602_v53, 0.0  ;;  %v618_v9 = vmul.f32 %v1122_v49, %v1194_v15  ;;  %v693_v16 = vsel %vm390_vm1, %v619_v6, 0.0 }
 0x10b   :  { %v1487_v60 = vsel %vm390_vm1, %v460_v63, 0.0  ;;  %v453_v15 = vmul.f32 %v1115_v44, %v1228_v32  ;;  %v452_v58 = vmul.f32 %v1115_v44, %v1240_v38  ;;  %v605_v27 = vmul.f32 %v1122_v49, %v1204_v20 }
 0x10c   :  { %v690_v18 = vsel %vm390_vm1, %v618_v9, 0.0  ;;  %v604_v31 = vmul.f32 %v1122_v49, %v1222_v28  ;;  %v620_v40 = vmul.f32 %v1122_v49, %v1240_v38 }
 0x10d   :  { %526 = vadd.xlane.f32.xlu1 %v1291_v3  ;;  %523 = vadd.xlane.f32.xlu0 %v1294_v4  ;;  %v437_v3 = vmul.f32 %v1115_v44, %v1204_v20  ;;  %v436_v4 = vmul.f32 %v1115_v44, %v1222_v28  ;;  %v531_v21 = vsel %vm390_vm1, %v453_v15, 0.0  ;;  %v528_v26 = vsel %vm390_vm1, %v452_v58, 0.0 }
 0x10e   :  { %v651_v33 = vsel %vm390_vm1, %v605_v27, 0.0  ;;  %v648_v36 = vsel %vm390_vm1, %v604_v31, 0.0  ;;  %v621_v44 = vmul.f32 %v1122_v49, %v1228_v32  ;;  %v696_v20 = vsel %vm390_vm1, %v620_v40, 0.0 }
 0x10f   :  { %v483_v57 = vsel %vm390_vm1, %v437_v3, 0.0  ;;  %v480_v14 = vsel %vm390_vm1, %v436_v4, 0.0 }
 0x110   :  { %v699_v45 = vsel %vm390_vm1, %v621_v44, 0.0 }
 0x111   :  { %646 = vadd.xlane.f32.xlu1 %v645_v11  ;;  %643 = vadd.xlane.f32.xlu0 %v642_v12 }
 0x115   :  { %694 = vadd.xlane.f32.xlu1 %v693_v16  ;;  %691 = vadd.xlane.f32.xlu0 %v690_v18 }
 0x119   :  { %484 = vadd.xlane.f32.xlu1 %v483_v57  ;;  %481 = vadd.xlane.f32.xlu0 %v480_v14 }
 0x11d   :  { %532 = vadd.xlane.f32.xlu1 %v531_v21  ;;  %529 = vadd.xlane.f32.xlu0 %v528_v26 }
 0x121   :  { %652 = vadd.xlane.f32.xlu1 %v651_v33  ;;  %649 = vadd.xlane.f32.xlu0 %v648_v36 }
 0x125   :  { %700 = vadd.xlane.f32.xlu1 %v699_v45  ;;  %697 = vadd.xlane.f32.xlu0 %v696_v20 }
 0x129   :  { %490 = vadd.xlane.f32.xlu1 %v1307_v7  ;;  %487 = vadd.xlane.f32.xlu0 %v1310_v8 }
 0x12d   :  { %538 = vadd.xlane.f32.xlu1 %v1315_v17  ;;  %535 = vadd.xlane.f32.xlu0 %v1325_v24 }
 0x131   :  { %658 = vadd.xlane.f32.xlu1 %v1328_v25  ;;  %655 = vadd.xlane.f32.xlu0 %v1333_v29 }
 0x135   :  { %706 = vadd.xlane.f32.xlu1 %v1347_v34  ;;  %703 = vadd.xlane.f32.xlu0 %v1350_v35 }
 0x139   :  { %496 = vadd.xlane.f32.xlu1 %v1359_v42  ;;  %493 = vadd.xlane.f32.xlu0 %v1362_v43 }
 0x13d   :  { %544 = vadd.xlane.f32.xlu1 %v1367_v50  ;;  %541 = vadd.xlane.f32.xlu0 %v1377_v56 }
 0x141   :  { %664 = vadd.xlane.f32.xlu1 %v1380_v52  ;;  %661 = vadd.xlane.f32.xlu0 %v1385_v61 }
 0x145   :  { %712 = vadd.xlane.f32.xlu1 %v1399_v2  ;;  %709 = vadd.xlane.f32.xlu0 %v1402_v5 }
 0x149   :  { %502 = vadd.xlane.f32.xlu1 %v1413_v10  ;;  %499 = vadd.xlane.f32.xlu0 %v1416_v13 }
 0x14d   :  { %550 = vadd.xlane.f32.xlu1 %v1421_v19  ;;  %547 = vadd.xlane.f32.xlu0 %v1431_v22 }
 0x151   :  { %670 = vadd.xlane.f32.xlu1 %v1434_v23  ;;  %667 = vadd.xlane.f32.xlu0 %v1439_v30 }
 0x155   :  { %718 = vadd.xlane.f32.xlu1 %v1455_v37  ;;  %715 = vadd.xlane.f32.xlu0 %v1458_v39 }
 0x159   :  { %508 = vadd.xlane.f32.xlu1 %v1467_v41  ;;  %505 = vadd.xlane.f32.xlu0 %v1470_v59 }
 0x15d   :  { %556 = vadd.xlane.f32.xlu1 %v1475_v47  ;;  %553 = vadd.xlane.f32.xlu0 %v1487_v60 }
 0x161   :  { %676 = vadd.xlane.f32.xlu1 %v1478_v48  ;;  %673 = vadd.xlane.f32.xlu0 %v1490_v62 }
 0x165   :  { %724 = vadd.xlane.f32.xlu1 %v1495_v0  ;;  %721 = vadd.xlane.f32.xlu0 %v1498_v1 }
 0x176   :  { %v515_v49 = vpop.xlane.xlu1 %514  ;;  %v467_v28 = vpop.xlane.xlu0 %466 }
 0x177   :  { %576 = vst.msk [vmem:[%s1826_s6 + $0x88] sm:$0xff] %vm558_vm2, %v515_v49  ;;  %560 = vst.msk [vmem:[%s1826_s6 + $0x8] sm:$0xff] %vm558_vm2, %v467_v28 }
 0x17a   :  { %v635_v32 = vpop.xlane.xlu1 %634  ;;  %v464_v38 = vpop.xlane.xlu0 %463 }
 0x17b   :  { %727 = vst.msk [vmem:[%s1827_s7 + $0x8] sm:$0xff] %vm558_vm2, %v635_v32  ;;  %559 = vst.msk [vmem:[%s1826_s6] sm:$0xff] %vm558_vm2, %v464_v38 }
 0x17e   :  { %v683_v7 = vpop.xlane.xlu1 %682  ;;  %v512_v8 = vpop.xlane.xlu0 %511 }
 0x17f   :  { %743 = vst.msk [vmem:[%s1827_s7 + $0x88] sm:$0xff] %vm558_vm2, %v683_v7  ;;  %575 = vst.msk [vmem:[%s1826_s6 + $0x80] sm:$0xff] %vm558_vm2, %v512_v8 }
 0x182   :  { %v473_v17 = vpop.xlane.xlu1 %472  ;;  %v632_v24 = vpop.xlane.xlu0 %631 }
 0x183   :  { %562 = vst.msk [vmem:[%s1826_s6 + $0x18] sm:$0xff] %vm558_vm2, %v473_v17  ;;  %726 = vst.msk [vmem:[%s1827_s7] sm:$0xff] %vm558_vm2, %v632_v24 }
 0x186   :  { %v521_v25 = vpop.xlane.xlu1 %520  ;;  %v680_v29 = vpop.xlane.xlu0 %679 }
 0x187   :  { %578 = vst.msk [vmem:[%s1826_s6 + $0x98] sm:$0xff] %vm558_vm2, %v521_v25  ;;  %742 = vst.msk [vmem:[%s1827_s7 + $0x80] sm:$0xff] %vm558_vm2, %v680_v29 }
 0x18a   :  { %v641_v34 = vpop.xlane.xlu1 %640  ;;  %v518_v35 = vpop.xlane.xlu0 %517 }
 0x18b   :  { %729 = vst.msk [vmem:[%s1827_s7 + $0x18] sm:$0xff] %vm558_vm2, %v641_v34  ;;  %577 = vst.msk [vmem:[%s1826_s6 + $0x90] sm:$0xff] %vm558_vm2, %v518_v35 }
 0x18e   :  { %v689_v42 = vpop.xlane.xlu1 %688  ;;  %v638_v43 = vpop.xlane.xlu0 %637 }
 0x18f   :  { %745 = vst.msk [vmem:[%s1827_s7 + $0x98] sm:$0xff] %vm558_vm2, %v689_v42  ;;  %728 = vst.msk [vmem:[%s1827_s7 + $0x10] sm:$0xff] %vm558_vm2, %v638_v43 }
 0x192   :  { %v470_v50 = vpop.xlane.xlu1 %469  ;;  %v686_v56 = vpop.xlane.xlu0 %685 }
 0x193   :  { %561 = vst.msk [vmem:[%s1826_s6 + $0x10] sm:$0xff] %vm558_vm2, %v470_v50  ;;  %744 = vst.msk [vmem:[%s1827_s7 + $0x90] sm:$0xff] %vm558_vm2, %v686_v56 }
 0x196   :  { %v479_v52 = vpop.xlane.xlu1 %478  ;;  %v476_v61 = vpop.xlane.xlu0 %475 }
 0x197   :  { %564 = vst.msk [vmem:[%s1826_s6 + $0x28] sm:$0xff] %vm558_vm2, %v479_v52  ;;  %563 = vst.msk [vmem:[%s1826_s6 + $0x20] sm:$0xff] %vm558_vm2, %v476_v61 }
 0x19a   :  { %v527_v2 = vpop.xlane.xlu1 %526  ;;  %v524_v5 = vpop.xlane.xlu0 %523 }
 0x19b   :  { %580 = vst.msk [vmem:[%s1826_s6 + $0xa8] sm:$0xff] %vm558_vm2, %v527_v2  ;;  %579 = vst.msk [vmem:[%s1826_s6 + $0xa0] sm:$0xff] %vm558_vm2, %v524_v5 }
 0x19e   :  { %v647_v10 = vpop.xlane.xlu1 %646  ;;  %v644_v13 = vpop.xlane.xlu0 %643 }
 0x19f   :  { %731 = vst.msk [vmem:[%s1827_s7 + $0x28] sm:$0xff] %vm558_vm2, %v647_v10  ;;  %730 = vst.msk [vmem:[%s1827_s7 + $0x20] sm:$0xff] %vm558_vm2, %v644_v13 }
 0x1a2   :  { %v695_v19 = vpop.xlane.xlu1 %694  ;;  %v692_v22 = vpop.xlane.xlu0 %691 }
 0x1a3   :  { %747 = vst.msk [vmem:[%s1827_s7 + $0xa8] sm:$0xff] %vm558_vm2, %v695_v19  ;;  %746 = vst.msk [vmem:[%s1827_s7 + $0xa0] sm:$0xff] %vm558_vm2, %v692_v22 }
 0x1a6   :  { %v485_v23 = vpop.xlane.xlu1 %484  ;;  %v482_v30 = vpop.xlane.xlu0 %481 }
 0x1a7   :  { %566 = vst.msk [vmem:[%s1826_s6 + $0x38] sm:$0xff] %vm558_vm2, %v485_v23  ;;  %565 = vst.msk [vmem:[%s1826_s6 + $0x30] sm:$0xff] %vm558_vm2, %v482_v30 }
 0x1aa   :  { %v533_v37 = vpop.xlane.xlu1 %532  ;;  %v530_v39 = vpop.xlane.xlu0 %529 }
 0x1ab   :  { %582 = vst.msk [vmem:[%s1826_s6 + $0xb8] sm:$0xff] %vm558_vm2, %v533_v37  ;;  %581 = vst.msk [vmem:[%s1826_s6 + $0xb0] sm:$0xff] %vm558_vm2, %v530_v39 }
 0x1ae   :  { %v653_v41 = vpop.xlane.xlu1 %652  ;;  %v650_v59 = vpop.xlane.xlu0 %649 }
 0x1af   :  { %733 = vst.msk [vmem:[%s1827_s7 + $0x38] sm:$0xff] %vm558_vm2, %v653_v41  ;;  %732 = vst.msk [vmem:[%s1827_s7 + $0x30] sm:$0xff] %vm558_vm2, %v650_v59 }
 0x1b2   :  { %v701_v63 = vpop.xlane.xlu1 %700  ;;  %v698_v46 = vpop.xlane.xlu0 %697 }
 0x1b3   :  { %749 = vst.msk [vmem:[%s1827_s7 + $0xb8] sm:$0xff] %vm558_vm2, %v701_v63  ;;  %748 = vst.msk [vmem:[%s1827_s7 + $0xb0] sm:$0xff] %vm558_vm2, %v698_v46 }
 0x1b6   :  { %v491_v47 = vpop.xlane.xlu1 %490  ;;  %v488_v48 = vpop.xlane.xlu0 %487 }
 0x1b7   :  { %568 = vst.msk [vmem:[%s1826_s6 + $0x48] sm:$0xff] %vm558_vm2, %v491_v47  ;;  %567 = vst.msk [vmem:[%s1826_s6 + $0x40] sm:$0xff] %vm558_vm2, %v488_v48 }
 0x1ba   :  { %v539_v51 = vpop.xlane.xlu1 %538  ;;  %v536_v54 = vpop.xlane.xlu0 %535 }
 0x1bb   :  { %584 = vst.msk [vmem:[%s1826_s6 + $0xc8] sm:$0xff] %vm558_vm2, %v539_v51  ;;  %583 = vst.msk [vmem:[%s1826_s6 + $0xc0] sm:$0xff] %vm558_vm2, %v536_v54 }
 0x1be   :  { %v659_v55 = vpop.xlane.xlu1 %658  ;;  %v656_v53 = vpop.xlane.xlu0 %655 }
 0x1bf   :  { %735 = vst.msk [vmem:[%s1827_s7 + $0x48] sm:$0xff] %vm558_vm2, %v659_v55  ;;  %734 = vst.msk [vmem:[%s1827_s7 + $0x40] sm:$0xff] %vm558_vm2, %v656_v53 }
 0x1c2   :  { %v707_v60 = vpop.xlane.xlu1 %706  ;;  %v704_v62 = vpop.xlane.xlu0 %703 }
 0x1c3   :  { %751 = vst.msk [vmem:[%s1827_s7 + $0xc8] sm:$0xff] %vm558_vm2, %v707_v60  ;;  %750 = vst.msk [vmem:[%s1827_s7 + $0xc0] sm:$0xff] %vm558_vm2, %v704_v62 }
 0x1c6   :  { %v497_v0 = vpop.xlane.xlu1 %496  ;;  %v494_v1 = vpop.xlane.xlu0 %493 }
 0x1c7   :  { %570 = vst.msk [vmem:[%s1826_s6 + $0x58] sm:$0xff] %vm558_vm2, %v497_v0  ;;  %569 = vst.msk [vmem:[%s1826_s6 + $0x50] sm:$0xff] %vm558_vm2, %v494_v1 }
 0x1ca   :  { %v545_v11 = vpop.xlane.xlu1 %544  ;;  %v542_v12 = vpop.xlane.xlu0 %541 }
 0x1cb   :  { %586 = vst.msk [vmem:[%s1826_s6 + $0xd8] sm:$0xff] %vm558_vm2, %v545_v11  ;;  %585 = vst.msk [vmem:[%s1826_s6 + $0xd0] sm:$0xff] %vm558_vm2, %v542_v12 }
 0x1ce   :  { %v665_v6 = vpop.xlane.xlu1 %664  ;;  %v662_v9 = vpop.xlane.xlu0 %661 }
 0x1cf   :  { %737 = vst.msk [vmem:[%s1827_s7 + $0x58] sm:$0xff] %vm558_vm2, %v665_v6  ;;  %736 = vst.msk [vmem:[%s1827_s7 + $0x50] sm:$0xff] %vm558_vm2, %v662_v9 }
 0x1d2   :  { %v713_v3 = vpop.xlane.xlu1 %712  ;;  %v710_v4 = vpop.xlane.xlu0 %709 }
 0x1d3   :  { %753 = vst.msk [vmem:[%s1827_s7 + $0xd8] sm:$0xff] %vm558_vm2, %v713_v3  ;;  %752 = vst.msk [vmem:[%s1827_s7 + $0xd0] sm:$0xff] %vm558_vm2, %v710_v4 }
 0x1d6   :  { %v503_v16 = vpop.xlane.xlu1 %502  ;;  %v500_v18 = vpop.xlane.xlu0 %499 }
 0x1d7   :  { %572 = vst.msk [vmem:[%s1826_s6 + $0x68] sm:$0xff] %vm558_vm2, %v503_v16  ;;  %571 = vst.msk [vmem:[%s1826_s6 + $0x60] sm:$0xff] %vm558_vm2, %v500_v18 }
 0x1da   :  { %v551_v57 = vpop.xlane.xlu1 %550  ;;  %v548_v14 = vpop.xlane.xlu0 %547 }
 0x1db   :  { %588 = vst.msk [vmem:[%s1826_s6 + $0xe8] sm:$0xff] %vm558_vm2, %v551_v57  ;;  %587 = vst.msk [vmem:[%s1826_s6 + $0xe0] sm:$0xff] %vm558_vm2, %v548_v14 }
 0x1de   :  { %v671_v15 = vpop.xlane.xlu1 %670  ;;  %v668_v58 = vpop.xlane.xlu0 %667 }
 0x1df   :  { %739 = vst.msk [vmem:[%s1827_s7 + $0x68] sm:$0xff] %vm558_vm2, %v671_v15  ;;  %738 = vst.msk [vmem:[%s1827_s7 + $0x60] sm:$0xff] %vm558_vm2, %v668_v58 }
 0x1e2   :  { %v719_v21 = vpop.xlane.xlu1 %718  ;;  %v716_v26 = vpop.xlane.xlu0 %715 }
 0x1e3   :  { %755 = vst.msk [vmem:[%s1827_s7 + $0xe8] sm:$0xff] %vm558_vm2, %v719_v21  ;;  %754 = vst.msk [vmem:[%s1827_s7 + $0xe0] sm:$0xff] %vm558_vm2, %v716_v26 }
 0x1e6   :  { %v509_v27 = vpop.xlane.xlu1 %508  ;;  %v506_v31 = vpop.xlane.xlu0 %505 }
 0x1e7   :  { %574 = vst.msk [vmem:[%s1826_s6 + $0x78] sm:$0xff] %vm558_vm2, %v509_v27  ;;  %573 = vst.msk [vmem:[%s1826_s6 + $0x70] sm:$0xff] %vm558_vm2, %v506_v31 }
 0x1ea   :  { %v557_v33 = vpop.xlane.xlu1 %556  ;;  %v554_v36 = vpop.xlane.xlu0 %553 }
 0x1eb   :  { %590 = vst.msk [vmem:[%s1826_s6 + $0xf8] sm:$0xff] %vm558_vm2, %v557_v33  ;;  %589 = vst.msk [vmem:[%s1826_s6 + $0xf0] sm:$0xff] %vm558_vm2, %v554_v36 }
 0x1ee   :  { %v677_v44 = vpop.xlane.xlu1 %676  ;;  %v674_v40 = vpop.xlane.xlu0 %673 }
 0x1ef   :  { %741 = vst.msk [vmem:[%s1827_s7 + $0x78] sm:$0xff] %vm558_vm2, %v677_v44  ;;  %740 = vst.msk [vmem:[%s1827_s7 + $0x70] sm:$0xff] %vm558_vm2, %v674_v40 }
 0x1f2   :  { %v725_v45 = vpop.xlane.xlu1 %724  ;;  %v722_v20 = vpop.xlane.xlu0 %721 }
 0x1f3   :  { %757 = vst.msk [vmem:[%s1827_s7 + $0xf8] sm:$0xff] %vm558_vm2, %v725_v45  ;;  %756 = vst.msk [vmem:[%s1827_s7 + $0xf0] sm:$0xff] %vm558_vm2, %v722_v20 }

</bundles_post_ra>
